<compile_context>
chip_gen: v7x
topology: tpu7x:2x2x1
jax: 0.10.0
libtpu: 0.0.40
codegen_flags: <defaults>
</compile_context>

<pallas_src>
import functools
import math

import jax
import jax.numpy as jnp
from jax import lax
from jax.experimental import pallas as pl
from jax.experimental.pallas import tpu as pltpu


def _softmax_parts(x, need_probs=True):
    """Return (log_softmax(x), softmax(x)) with a single exp pass over (tm, V)."""
    m = jnp.max(x, axis=-1, keepdims=True)
    z = x - m
    e = jnp.exp(z)
    s = jnp.sum(e, axis=-1, keepdims=True)
    lp = z - jnp.log(s)
    if not need_probs:
        return lp, None
    return lp, e * (1.0 / s)


def _jsd_kernel(tgt_ref, xs_ref, xt_ref, ws_ref, wt_ref, out_ref, *,
                n_rows, tile_rows, weight_hard_loss, weight_soft_loss, beta,
                ignore_index, inv_temperature, temperature_is_one):
    # ---- fused linear heads: bf16 MXU inputs, f32 accumulation -----------------
    # weights keep the nn.Linear (V, H) layout; transpose is folded into the
    # contraction (x @ W^T) instead of being paid as an HBM rewrite in the wrapper.
    nt = (((1,), (1,)), ((), ()))
    s_logits = lax.dot_general(xs_ref[...], ws_ref[...], dimension_numbers=nt,
                               preferred_element_type=jnp.float32)
    t_logits = lax.dot_general(xt_ref[...], wt_ref[...], dimension_numbers=nt,
                               preferred_element_type=jnp.float32)
    tm, V = s_logits.shape

    # ---- row-validity mask (ragged last tile; no host-side padding) ------------
    row_ids = pl.program_id(0) * tile_rows + lax.broadcasted_iota(jnp.int32, (tm, 1), 0)
    row_valid = row_ids < n_rows

    tgt = tgt_ref[...]                                            # (tm, 1) int32
    vocab_ids = lax.broadcasted_iota(jnp.int32, (tm, V), 1)
    onehot = vocab_ids == tgt

    # ---- soft-loss distributions (temperature-scaled), one softmax pass each ---
    if temperature_is_one:
        s_scaled, t_scaled = s_logits, t_logits
    else:
        s_scaled = s_logits * inv_temperature
        t_scaled = t_logits * inv_temperature
    s_lp, s_p = _softmax_parts(s_scaled, need_probs=(beta > 0.0))
    t_lp, t_p = _softmax_parts(t_scaled, need_probs=(beta < 1.0))

    # ---- hard loss: NLL on RAW student logits, reduction="sum" -----------------
    if temperature_is_one:
        # reuse the soft-loss log-softmax (one log-softmax per head per tile)
        picked_lp = jnp.sum(jnp.where(onehot, s_lp, 0.0), axis=-1, keepdims=True)
    else:
        # no full raw log-softmax materialized: picked_logit - logsumexp suffices
        m_raw = jnp.max(s_logits, axis=-1, keepdims=True)
        lse_raw = m_raw + jnp.log(jnp.sum(jnp.exp(s_logits - m_raw),
                                          axis=-1, keepdims=True))
        picked_logit = jnp.sum(jnp.where(onehot, s_logits, 0.0), axis=-1, keepdims=True)
        picked_lp = picked_logit - lse_raw
    valid = row_valid & (tgt != ignore_index)
    nll_sum = jnp.sum(jnp.where(valid, -picked_lp, 0.0))

    # ---- soft loss: generalized JSD, reduction="sum" ---------------------------
    if beta <= 0.0:
        combined = t_p * (t_lp - s_lp)                       # KL(P_t || P_s)
    elif beta >= 1.0:
        combined = s_p * (s_lp - t_lp)                       # KL(P_s || P_t)
    else:
        # probability-space mixture (exactly Liger's formulation); clamp guards log(0)
        mix = (1.0 - beta) * s_p + beta * t_p
        log_m = jnp.log(jnp.maximum(mix, jnp.finfo(jnp.float32).tiny))
        combined = ((1.0 - beta) * (s_p * (s_lp - log_m))
                    + beta * (t_p * (t_lp - log_m)))         # fused KL reduction
    row_jsd = jnp.sum(combined, axis=-1, keepdims=True)
    jsd_sum = jnp.sum(jnp.where(row_valid, row_jsd, 0.0))

    partial = weight_hard_loss * nll_sum + weight_soft_loss * jsd_sum
    # lane-dense per-chunk partial block (final tiny sum done in JAX)
    out_ref[...] = jnp.zeros(out_ref.shape, out_ref.dtype) + partial


def _per_core_vmem_bytes():
    cap = 0
    try:
        cap = int(getattr(pltpu.get_tpu_info(), "vmem_capacity_bytes", 0) or 0)
    except Exception:
        cap = 0
    if cap <= 0:
        cap = 64 * 1024 * 1024            # conservative default (v7x per-TC figure)
    try:
        kind = jax.devices()[0].device_kind.lower()
    except Exception:
        kind = ""
    if "v7" in kind:
        # v7x: 64 MiB per TensorCore, and the parallel grid duplicates resident
        # weight blocks on both cores — never budget against a chip-level figure.
        cap = min(cap, 64 * 1024 * 1024)
    return cap


def _pick_tile_rows(BT, V, H, H2, vmem_capacity):
    budget = int(vmem_capacity * 0.45)                 # headroom for compiler scratch
    weight_bytes = 2 * (H + H2) * V * 2                # bf16 weights, default double-buffered
    per_row = 9 * V * 4 + 2 * 2 * (H + H2) * 2         # live f32 (tm,V) temps + bf16 act bufs
    avail = budget - weight_bytes
    tm = avail // per_row if avail > 0 else 8
    tm = max(8, min(512, (tm // 8) * 8))               # multiple of 8, fill the MXU M dim
    if tm >= BT:
        tm = BT                                        # single full-batch tile
    return int(tm)


@functools.partial(
    jax.jit,
    static_argnames=("weight_hard_loss", "weight_soft_loss", "beta",
                     "ignore_index", "temperature", "tile_rows"))
def _liger_jsd_loss_jit(student, student_weight, teacher, teacher_weight, target, *,
                        weight_hard_loss, weight_soft_loss, beta, ignore_index,
                        temperature, tile_rows):
    BT, H2 = student.shape
    _, H = teacher.shape
    V = student_weight.shape[0]

    vmem_cap = _per_core_vmem_bytes()
    if tile_rows is None:
        tile_rows = _pick_tile_rows(BT, V, H, H2, vmem_cap)
    n_chunks = -(-BT // tile_rows)

    # bf16 MXU inputs (no-ops when the caller already supplies bf16 parameters);
    # weights keep their (V, H) layout — no per-call transpose / HBM rewrite.
    xs = student.astype(jnp.bfloat16)
    xt = teacher.astype(jnp.bfloat16)
    ws = student_weight.astype(jnp.bfloat16)
    wt = teacher_weight.astype(jnp.bfloat16)
    tgt = target.reshape(BT, 1).astype(jnp.int32)

    kernel = functools.partial(
        _jsd_kernel,
        n_rows=BT, tile_rows=tile_rows,
        weight_hard_loss=float(weight_hard_loss),
        weight_soft_loss=float(weight_soft_loss),
        beta=float(beta), ignore_index=int(ignore_index),
        inv_temperature=float(1.0 / temperature),
        temperature_is_one=(float(temperature) == 1.0))

    vmem_limit = min(int(vmem_cap * 0.75), 100 * 1024 * 1024)

    out = pl.pallas_call(
        kernel,
        out_shape=jax.ShapeDtypeStruct((n_chunks, 8, 128), jnp.float32),
        grid_spec=pltpu.PrefetchScalarGridSpec(
            num_scalar_prefetch=0,
            grid=(n_chunks,),
            in_specs=[
                pl.BlockSpec((tile_rows, 1), lambda i: (i, 0)),     # target
                pl.BlockSpec((tile_rows, H2), lambda i: (i, 0)),    # student input
                pl.BlockSpec((tile_rows, H), lambda i: (i, 0)),     # teacher input
                pl.BlockSpec((V, H2), lambda i: (0, 0)),            # student weight (resident)
                pl.BlockSpec((V, H), lambda i: (0, 0)),             # teacher weight (resident)
            ],
            out_specs=pl.BlockSpec((1, 8, 128), lambda i: (i, 0, 0)),
        ),
        compiler_params=pltpu.CompilerParams(
            dimension_semantics=("parallel",),        # independent chunks -> megacore OK
            vmem_limit_bytes=vmem_limit,
        ),
    )(tgt, xs, xt, ws, wt)

    # Liger semantics: per-chunk (weighted hard_sum + soft_sum) / BT, summed over chunks.
    return jnp.sum(out[:, 0, 0]) / BT


def liger_jsd_loss_pallas(student, student_weight, teacher, teacher_weight, target,
                          weight_hard_loss=0.5, weight_soft_loss=0.5, beta=0.5,
                          ignore_index=-100, temperature=1.0, tile_rows=None):
    # TODO(synk): bias terms are not fused (module default bias=False, matching Liger).
    return _liger_jsd_loss_jit(
        student, student_weight, teacher, teacher_weight, target,
        weight_hard_loss=float(weight_hard_loss),
        weight_soft_loss=float(weight_soft_loss),
        beta=float(beta), ignore_index=int(ignore_index),
        temperature=float(temperature),
        tile_rows=None if tile_rows is None else int(tile_rows))


def _reference_loss(student, student_weight, teacher, teacher_weight, target,
                    weight_hard_loss=0.5, weight_soft_loss=0.5, beta=0.5,
                    ignore_index=-100, temperature=1.0):
    """Pure-JAX LigerFusedLinearJSDFunction forward (bf16 matmuls, f32 math)."""
    BT = student.shape[0]
    s_logits = jnp.dot(student.astype(jnp.bfloat16),
                       student_weight.astype(jnp.bfloat16).T,
                       preferred_element_type=jnp.float32)
    t_logits = jnp.dot(teacher.astype(jnp.bfloat16),
                       teacher_weight.astype(jnp.bfloat16).T,
                       preferred_element_type=jnp.float32)

    # hard CE on raw student logits
    s_lp_hard = jax.nn.log_softmax(s_logits, axis=-1)
    valid = target != ignore_index
    safe_tgt = jnp.where(valid, target, 0)
    picked = jnp.take_along_axis(s_lp_hard, safe_tgt[:, None], axis=1)[:, 0]
    nll_sum = jnp.sum(jnp.where(valid, -picked, 0.0))

    # generalized JSD on temperature-scaled logits
    s_lp = jax.nn.log_softmax(s_logits / temperature, axis=-1)
    t_lp = jax.nn.log_softmax(t_logits / temperature, axis=-1)
    s_p, t_p = jnp.exp(s_lp), jnp.exp(t_lp)
    if beta == 0.0:
        jsd_sum = jnp.sum(t_p * (t_lp - s_lp))
    elif beta == 1.0:
        jsd_sum = jnp.sum(s_p * (s_lp - t_lp))
    else:
        log_m = jnp.log((1.0 - beta) * s_p + beta * t_p)
        jsd_sum = jnp.sum(beta * (t_p * (t_lp - log_m))
                          + (1.0 - beta) * (s_p * (s_lp - log_m)))

    return weight_hard_loss * (nll_sum / BT) + weight_soft_loss * (jsd_sum / BT)


if __name__ == "__main__":
    # small shapes consistent with the module: H=32 (student hidden H//2=16), V=256,
    # BT = batch(2) * seq(8) = 16 tokens; parameters/activations in bf16 (module dtype)
    B, T, H, V = 2, 8, 32, 256
    BT, H2 = B * T, H // 2
    ignore_index = -100
    dtype = jnp.bfloat16

    key = jax.random.PRNGKey(0)
    k1, k2, k3, k4, k5 = jax.random.split(key, 5)

    # deterministic "nn.Linear(bias=False)" style init: U(-1/sqrt(fan_in), 1/sqrt(fan_in))
    student_weight = jax.random.uniform(
        k1, (V, H2), jnp.float32, -1.0 / math.sqrt(H2), 1.0 / math.sqrt(H2)).astype(dtype)
    teacher_weight = jax.random.uniform(
        k2, (V, H), jnp.float32, -1.0 / math.sqrt(H), 1.0 / math.sqrt(H)).astype(dtype)
    student = jax.random.normal(k3, (BT, H2), jnp.float32).astype(dtype)
    teacher = jax.random.normal(k4, (BT, H), jnp.float32).astype(dtype)
    target = jax.random.randint(k5, (BT,), 0, V, jnp.int32)
    target = target.at[3].set(ignore_index)   # exercise ignore_index masking

    configs = [
        dict(),                              # defaults: beta=0.5, temperature=1.0
        dict(beta=0.0),                      # KL(teacher || student) special case
        dict(beta=0.5, temperature=2.0),     # temperature != 1 hard-CE path
    ]
    for cfg in configs:
        loss = jax.block_until_ready(
            liger_jsd_loss_pallas(student, student_weight, teacher, teacher_weight,
                                  target, ignore_index=ignore_index, **cfg))
        ref = jax.block_until_ready(
            _reference_loss(student, student_weight, teacher, teacher_weight, target,
                            ignore_index=ignore_index, **cfg))
        assert jnp.allclose(loss, ref, rtol=1e-3, atol=1e-3), (cfg, loss, ref)

    # ragged last token tile (BT=12, tile_rows=8): exercises the in-kernel row mask
    loss_r = jax.block_until_ready(
        liger_jsd_loss_pallas(student[:12], student_weight, teacher[:12], teacher_weight,
                              target[:12], ignore_index=ignore_index, tile_rows=8))
    ref_r = jax.block_until_ready(
        _reference_loss(student[:12], student_weight, teacher[:12], teacher_weight,
                        target[:12], ignore_index=ignore_index))
    assert jnp.allclose(loss_r, ref_r, rtol=1e-3, atol=1e-3), (loss_r, ref_r)

    print("KERNEL_OK")
</pallas_src>

<mosaic_0001>
module attributes {stable_mosaic.version = 11 : i64} {
  func.func @_jsd_kernel(%arg0: i32, %arg1: memref<16x1xi32, #tpu.memory_space<vmem>>, %arg2: memref<16x16xbf16, #tpu.memory_space<vmem>>, %arg3: memref<16x32xbf16, #tpu.memory_space<vmem>>, %arg4: memref<256x16xbf16, #tpu.memory_space<vmem>>, %arg5: memref<256x32xbf16, #tpu.memory_space<vmem>>, %arg6: memref<1x8x128xf32, #tpu.memory_space<vmem>>) attributes {dimension_semantics = [#tpu.dimension_semantics<parallel>], iteration_bounds = array<i64: 1>, scalar_prefetch = 0 : i64, scratch_operands = 0 : i64, tpu.core_type = #tpu.core_type<tc>, window_params = [{transform_indices = @transform_0, window_bounds = array<i64: 16, 1>}, {transform_indices = @transform_1, window_bounds = array<i64: 16, 16>}, {transform_indices = @transform_2, window_bounds = array<i64: 16, 32>}, {pipeline_mode = #tpu.pipeline_mode<synchronous>, transform_indices = @transform_3, window_bounds = array<i64: 256, 16>}, {pipeline_mode = #tpu.pipeline_mode<synchronous>, transform_indices = @transform_4, window_bounds = array<i64: 256, 32>}, {transform_indices = @transform_5, window_bounds = array<i64: 1, 8, 128>}]} {
    %c0 = arith.constant 0 : index
    %c0_0 = arith.constant 0 : index
    %0 = vector.load %arg2[%c0, %c0_0] : memref<16x16xbf16, #tpu.memory_space<vmem>>, vector<16x16xbf16>
    %c0_1 = arith.constant 0 : index
    %c0_2 = arith.constant 0 : index
    %1 = vector.load %arg4[%c0_1, %c0_2] : memref<256x16xbf16, #tpu.memory_space<vmem>>, vector<256x16xbf16>
    %cst = arith.constant dense<0.000000e+00> : vector<16x256xf32>
    %2 = tpu.matmul %0, %1, %cst {dimension_numbers = #tpu.dot_dimension_numbers<[1], [1], [0], [0], [0, 0, 1, 0], [], []>} : vector<16x16xbf16>, vector<256x16xbf16>, vector<16x256xf32> -> vector<16x256xf32>
    %c0_3 = arith.constant 0 : index
    %c0_4 = arith.constant 0 : index
    %3 = vector.load %arg3[%c0_3, %c0_4] : memref<16x32xbf16, #tpu.memory_space<vmem>>, vector<16x32xbf16>
    %c0_5 = arith.constant 0 : index
    %c0_6 = arith.constant 0 : index
    %4 = vector.load %arg5[%c0_5, %c0_6] : memref<256x32xbf16, #tpu.memory_space<vmem>>, vector<256x32xbf16>
    %cst_7 = arith.constant dense<0.000000e+00> : vector<16x256xf32>
    %5 = tpu.matmul %3, %4, %cst_7 {dimension_numbers = #tpu.dot_dimension_numbers<[1], [1], [0], [0], [0, 0, 1, 0], [], []>} : vector<16x32xbf16>, vector<256x32xbf16>, vector<16x256xf32> -> vector<16x256xf32>
    %c16_i32 = arith.constant 16 : i32
    %6 = arith.muli %arg0, %c16_i32 : i32
    %7 = tpu.iota {dimensions = array<i32: 0>} : vector<16x1xi32>
    %8 = vector.broadcast %6 : i32 to vector<16x1xi32>
    %9 = arith.addi %8, %7 : vector<16x1xi32>
    %c16_i32_8 = arith.constant 16 : i32
    %10 = vector.broadcast %c16_i32_8 : i32 to vector<16x1xi32>
    %11 = arith.cmpi slt, %9, %10 : vector<16x1xi32>
    %c0_9 = arith.constant 0 : index
    %c0_10 = arith.constant 0 : index
    %12 = vector.load %arg1[%c0_9, %c0_10] : memref<16x1xi32, #tpu.memory_space<vmem>>, vector<16x1xi32>
    %13 = tpu.iota {dimensions = array<i32: 1>} : vector<16x256xi32>
    %14 = vector.broadcast %12 : vector<16x1xi32> to vector<16x256xi32>
    %15 = arith.cmpi eq, %13, %14 : vector<16x256xi32>
    %cst_11 = arith.constant dense<0xFF800000> : vector<16xf32>
    %16 = vector.multi_reduction <maximumf>, %2, %cst_11 [1] : vector<16x256xf32> to vector<16xf32>
    %17 = vector.shape_cast %16 : vector<16xf32> to vector<16x1xf32>
    %18 = vector.broadcast %17 : vector<16x1xf32> to vector<16x256xf32>
    %19 = arith.subf %2, %18 : vector<16x256xf32>
    %20 = math.exp %19 : vector<16x256xf32>
    %cst_12 = arith.constant dense<0.000000e+00> : vector<16xf32>
    %21 = vector.multi_reduction <add>, %20, %cst_12 [1] : vector<16x256xf32> to vector<16xf32>
    %22 = vector.shape_cast %21 : vector<16xf32> to vector<16x1xf32>
    %23 = math.log %22 : vector<16x1xf32>
    %24 = vector.broadcast %23 : vector<16x1xf32> to vector<16x256xf32>
    %25 = arith.subf %19, %24 : vector<16x256xf32>
    %cst_13 = arith.constant 1.000000e+00 : f32
    %26 = vector.broadcast %cst_13 : f32 to vector<16x1xf32>
    %27 = arith.divf %26, %22 : vector<16x1xf32>
    %28 = vector.broadcast %27 : vector<16x1xf32> to vector<16x256xf32>
    %29 = arith.mulf %20, %28 : vector<16x256xf32>
    %cst_14 = arith.constant dense<0xFF800000> : vector<16xf32>
    %30 = vector.multi_reduction <maximumf>, %5, %cst_14 [1] : vector<16x256xf32> to vector<16xf32>
    %31 = vector.shape_cast %30 : vector<16xf32> to vector<16x1xf32>
    %32 = vector.broadcast %31 : vector<16x1xf32> to vector<16x256xf32>
    %33 = arith.subf %5, %32 : vector<16x256xf32>
    %34 = math.exp %33 : vector<16x256xf32>
    %cst_15 = arith.constant dense<0.000000e+00> : vector<16xf32>
    %35 = vector.multi_reduction <add>, %34, %cst_15 [1] : vector<16x256xf32> to vector<16xf32>
    %36 = vector.shape_cast %35 : vector<16xf32> to vector<16x1xf32>
    %37 = math.log %36 : vector<16x1xf32>
    %38 = vector.broadcast %37 : vector<16x1xf32> to vector<16x256xf32>
    %39 = arith.subf %33, %38 : vector<16x256xf32>
    %cst_16 = arith.constant 1.000000e+00 : f32
    %40 = vector.broadcast %cst_16 : f32 to vector<16x1xf32>
    %41 = arith.divf %40, %36 : vector<16x1xf32>
    %42 = vector.broadcast %41 : vector<16x1xf32> to vector<16x256xf32>
    %43 = arith.mulf %34, %42 : vector<16x256xf32>
    %cst_17 = arith.constant 0.000000e+00 : f32
    %44 = vector.broadcast %cst_17 : f32 to vector<16x256xf32>
    %45 = arith.select %15, %25, %44 : vector<16x256xi1>, vector<16x256xf32>
    %cst_18 = arith.constant dense<0.000000e+00> : vector<16xf32>
    %46 = vector.multi_reduction <add>, %45, %cst_18 [1] : vector<16x256xf32> to vector<16xf32>
    %47 = vector.shape_cast %46 : vector<16xf32> to vector<16x1xf32>
    %c-100_i32 = arith.constant -100 : i32
    %48 = vector.broadcast %c-100_i32 : i32 to vector<16x1xi32>
    %49 = arith.cmpi ne, %12, %48 : vector<16x1xi32>
    %50 = arith.andi %11, %49 : vector<16x1xi1>
    %cst_19 = arith.constant 0.000000e+00 : f32
    %51 = vector.broadcast %cst_19 : f32 to vector<16x1xf32>
    %52 = arith.subf %51, %47 : vector<16x1xf32>
    %cst_20 = arith.constant 0.000000e+00 : f32
    %53 = vector.broadcast %cst_20 : f32 to vector<16x1xf32>
    %54 = arith.select %50, %52, %53 : vector<16x1xi1>, vector<16x1xf32>
    %55 = vector.shape_cast %54 : vector<16x1xf32> to vector<1x16x1xf32>
    %cst_21 = arith.constant dense<0.000000e+00> : vector<1xf32>
    %56 = vector.multi_reduction <add>, %55, %cst_21 [1, 2] : vector<1x16x1xf32> to vector<1xf32>
    %57 = vector.shape_cast %56 : vector<1xf32> to vector<1x1x1xf32>
    %58 = vector.extract %57[0, 0, 0] : f32 from vector<1x1x1xf32>
    %cst_22 = arith.constant 5.000000e-01 : f32
    %59 = vector.broadcast %cst_22 : f32 to vector<16x256xf32>
    %60 = arith.mulf %59, %29 : vector<16x256xf32>
    %cst_23 = arith.constant 5.000000e-01 : f32
    %61 = vector.broadcast %cst_23 : f32 to vector<16x256xf32>
    %62 = arith.mulf %61, %43 : vector<16x256xf32>
    %63 = arith.addf %60, %62 : vector<16x256xf32>
    %cst_24 = arith.constant 1.17549435E-38 : f32
    %64 = vector.broadcast %cst_24 : f32 to vector<16x256xf32>
    %65 = arith.maximumf %63, %64 : vector<16x256xf32>
    %66 = math.log %65 : vector<16x256xf32>
    %67 = arith.subf %25, %66 : vector<16x256xf32>
    %68 = arith.mulf %29, %67 : vector<16x256xf32>
    %cst_25 = arith.constant 5.000000e-01 : f32
    %69 = vector.broadcast %cst_25 : f32 to vector<16x256xf32>
    %70 = arith.mulf %69, %68 : vector<16x256xf32>
    %71 = arith.subf %39, %66 : vector<16x256xf32>
    %72 = arith.mulf %43, %71 : vector<16x256xf32>
    %cst_26 = arith.constant 5.000000e-01 : f32
    %73 = vector.broadcast %cst_26 : f32 to vector<16x256xf32>
    %74 = arith.mulf %73, %72 : vector<16x256xf32>
    %75 = arith.addf %70, %74 : vector<16x256xf32>
    %cst_27 = arith.constant dense<0.000000e+00> : vector<16xf32>
    %76 = vector.multi_reduction <add>, %75, %cst_27 [1] : vector<16x256xf32> to vector<16xf32>
    %77 = vector.shape_cast %76 : vector<16xf32> to vector<16x1xf32>
    %cst_28 = arith.constant 0.000000e+00 : f32
    %78 = vector.broadcast %cst_28 : f32 to vector<16x1xf32>
    %79 = arith.select %11, %77, %78 : vector<16x1xi1>, vector<16x1xf32>
    %80 = vector.shape_cast %79 : vector<16x1xf32> to vector<1x16x1xf32>
    %cst_29 = arith.constant dense<0.000000e+00> : vector<1xf32>
    %81 = vector.multi_reduction <add>, %80, %cst_29 [1, 2] : vector<1x16x1xf32> to vector<1xf32>
    %82 = vector.shape_cast %81 : vector<1xf32> to vector<1x1x1xf32>
    %83 = vector.extract %82[0, 0, 0] : f32 from vector<1x1x1xf32>
    %cst_30 = arith.constant 5.000000e-01 : f32
    %84 = arith.mulf %cst_30, %58 : f32
    %cst_31 = arith.constant 5.000000e-01 : f32
    %85 = arith.mulf %cst_31, %83 : f32
    %86 = arith.addf %84, %85 : f32
    %cst_32 = arith.constant 0.000000e+00 : f32
    %87 = vector.broadcast %cst_32 : f32 to vector<1x8x128xf32>
    %88 = vector.broadcast %86 : f32 to vector<1x8x128xf32>
    %89 = arith.addf %87, %88 : vector<1x8x128xf32>
    %c0_33 = arith.constant 0 : index
    %c0_34 = arith.constant 0 : index
    %c0_35 = arith.constant 0 : index
    %90 = vector.load %arg6[%c0_33, %c0_34, %c0_35] : memref<1x8x128xf32, #tpu.memory_space<vmem>>, vector<1x8x128xf32>
    tpu.vector_store %arg6[%c0_33, %c0_34, %c0_35], %89 {strides = array<i32>} : memref<1x8x128xf32, #tpu.memory_space<vmem>>, vector<1x8x128xf32>,
    return
  }
  func.func @transform_0(%arg0: i32) -> (i32, i32) {
    %c0_i32 = arith.constant 0 : i32
    %c0_i32_0 = arith.constant 0 : i32
    return %arg0, %c0_i32 : i32, i32
  }
  func.func @transform_1(%arg0: i32) -> (i32, i32) {
    %c0_i32 = arith.constant 0 : i32
    %c0_i32_0 = arith.constant 0 : i32
    return %arg0, %c0_i32 : i32, i32
  }
  func.func @transform_2(%arg0: i32) -> (i32, i32) {
    %c0_i32 = arith.constant 0 : i32
    %c0_i32_0 = arith.constant 0 : i32
    return %arg0, %c0_i32 : i32, i32
  }
  func.func @transform_3(%arg0: i32) -> (i32, i32) {
    %c0_i32 = arith.constant 0 : i32
    %c0_i32_0 = arith.constant 0 : i32
    %c0_i32_1 = arith.constant 0 : i32
    return %c0_i32, %c0_i32_0 : i32, i32
  }
  func.func @transform_4(%arg0: i32) -> (i32, i32) {
    %c0_i32 = arith.constant 0 : i32
    %c0_i32_0 = arith.constant 0 : i32
    %c0_i32_1 = arith.constant 0 : i32
    return %c0_i32, %c0_i32_0 : i32, i32
  }
  func.func @transform_5(%arg0: i32) -> (i32, i32, i32) {
    %c0_i32 = arith.constant 0 : i32
    %c0_i32_0 = arith.constant 0 : i32
    %c0_i32_1 = arith.constant 0 : i32
    return %arg0, %c0_i32, %c0_i32_0 : i32, i32, i32
  }
}

</mosaic_0001>

<bundles_post_ra>
// kernel: _liger_jsd_loss_jit.1
= control target key start
LH: loop header
LB: loop body
LE: loop exit
PB: predicated region body
PF: predicated region fallthrough
CT: control target
= control target key end

     0   :  { %vm140_vm0 = vcmask 130048   ;;  %vm354_vm1 = vcmask 261120   ;;  %v835_v62 = vmov 0   ;;  %vm571_vm8 = vcmask 7168   ;;  %s1081_s3 = inlined_call_operand.vmem [shape: bf16[256,16], index: 3, kind: input, shape index: {}]   ;;  %s1082_s4 = inlined_call_operand.vmem [shape: bf16[256,32], index: 4, kind: input, shape index: {}]   ;;  %s1083_s1 = inlined_call_operand.vmem [shape: bf16[16,16], index: 1, kind: input, shape index: {}]   ;;  %s1084_s2 = inlined_call_operand.vmem [shape: bf16[16,32], index: 2, kind: input, shape index: {}]   ;;  %s1085_s0 = inlined_call_operand.vmem [shape: s32[16,1], index: 0, kind: input, shape index: {}]   ;;  %s1086_s5 = inlined_call_operand.vmem [shape: f32[1,8,128], index: 5, kind: output, shape index: {}]  }
   0x1   :  { %v761_v0 = vld [vmem:[%s1081_s3 + $0x40] sm:$0xff]   ;;  %v765_v5 = vld [vmem:[%s1081_s3 + $0x48] sm:$0xff]   ;;  %v769_v11 = vld [vmem:[%s1081_s3 + $0x50] sm:$0xff]   ;;  %759 = vset.pattern.permute.xlu0 %v835_v62  ;;  %760 = vset.pattern.permute.xlu1 %v835_v62 }
   0x2   :  { %v762_v1 = vld [vmem:[%s1082_s4 + $0x40] sm:$0xff]   ;;  %738 = vmatprep.subr.msk.bf16.mxu0 %vm140_vm0, %v761_v0  ;;  %v766_v7 = vld [vmem:[%s1082_s4 + $0x48] sm:$0xff]   ;;  %v770_v13 = vld [vmem:[%s1082_s4 + $0x50] sm:$0xff]  }
   0x3   :  { %v763_v2 = vld [vmem:[%s1081_s3] sm:$0xff]   ;;  %746 = vmatprep.subr.msk.bf16.mxu1 %vm354_vm1, %v762_v1  ;;  %v767_v8 = vld [vmem:[%s1081_s3 + $0x8] sm:$0xff]   ;;  %v771_v14 = vld [vmem:[%s1081_s3 + $0x10] sm:$0xff]  }
   0x4   :  { %v764_v3 = vld [vmem:[%s1082_s4] sm:$0xff]   ;;  %v145_v4 = vsel %vm140_vm0, %v763_v2, 0  ;;  %v768_v9 = vld [vmem:[%s1082_s4 + $0x8] sm:$0xff]   ;;  %v148_v10 = vsel %vm140_vm0, %v767_v8, 0  ;;  %v772_v15 = vld [vmem:[%s1082_s4 + $0x10] sm:$0xff]   ;;  %v151_v16 = vsel %vm140_vm0, %v771_v14, 0 }
   0x5   :  { %703 = vmatpush3.bf16.xpose.msra.mxu0 %v145_v4  ;;  %v359_v6 = vsel %vm354_vm1, %v764_v3, 0  ;;  %v362_v12 = vsel %vm354_vm1, %v768_v9, 0  ;;  %v773_v17 = vld [vmem:[%s1081_s3 + $0x58] sm:$0xff]   ;;  %v365_v18 = vsel %vm354_vm1, %v772_v15, 0  ;;  %v777_v23 = vld [vmem:[%s1081_s3 + $0x60] sm:$0xff]   ;;  %v781_v31 = vld [vmem:[%s1081_s3 + $0x68] sm:$0xff]  }
   0x6   :  { %721 = vmatpush3.bf16.xpose.msra.mxu1 %v359_v6  ;;  %739 = vmatprep.subr.msk.bf16.mxu0 %vm140_vm0, %v765_v5  ;;  %v774_v19 = vld [vmem:[%s1082_s4 + $0x58] sm:$0xff]   ;;  %v778_v25 = vld [vmem:[%s1082_s4 + $0x60] sm:$0xff]   ;;  %v782_v33 = vld [vmem:[%s1082_s4 + $0x68] sm:$0xff]  }
   0x7   :  { %747 = vmatprep.subr.msk.bf16.mxu1 %vm354_vm1, %v766_v7  ;;  %v775_v20 = vld [vmem:[%s1081_s3 + $0x18] sm:$0xff]   ;;  %v779_v26 = vld [vmem:[%s1081_s3 + $0x20] sm:$0xff]   ;;  %v783_v34 = vld [vmem:[%s1081_s3 + $0x28] sm:$0xff]  }
   0x8   :  { %v776_v21 = vld [vmem:[%s1082_s4 + $0x18] sm:$0xff]   ;;  %v154_v22 = vsel %vm140_vm0, %v775_v20, 0  ;;  %v780_v27 = vld [vmem:[%s1082_s4 + $0x20] sm:$0xff]   ;;  %v157_v30 = vsel %vm140_vm0, %v779_v26, 0  ;;  %v784_v35 = vld [vmem:[%s1082_s4 + $0x28] sm:$0xff]   ;;  %v160_v36 = vsel %vm140_vm0, %v783_v34, 0  ;;  %v460_v34 = vlaneseq }
   0x9   :  { %v368_v24 = vsel %vm354_vm1, %v776_v21, 0  ;;  %v793_v28 = vld [vmem:[%s1083_s1] sm:$0xff]   ;;  %v371_v32 = vsel %vm354_vm1, %v780_v27, 0  ;;  %v785_v37 = vld [vmem:[%s1081_s3 + $0x70] sm:$0xff]   ;;  %v374_v38 = vsel %vm354_vm1, %v784_v35, 0  ;;  %v789_v43 = vld [vmem:[%s1081_s3 + $0x78] sm:$0xff]  }
   0xa   :  { %v794_v29 = vld [vmem:[%s1084_s2] sm:$0xff]   ;;  %718 = vmatprep.mubr.msk.bf16.mxu0 %vm140_vm0, %v793_v28  ;;  %v786_v39 = vld [vmem:[%s1082_s4 + $0x70] sm:$0xff]   ;;  %v790_v45 = vld [vmem:[%s1082_s4 + $0x78] sm:$0xff]  }
   0xb   :  { %736 = vmatprep.mubr.msk.bf16.mxu1 %vm354_vm1, %v794_v29  ;;  %v787_v40 = vld [vmem:[%s1081_s3 + $0x30] sm:$0xff]   ;;  %v791_v46 = vld [vmem:[%s1081_s3 + $0x38] sm:$0xff]  }
   0xc   :  { %v788_v41 = vld [vmem:[%s1082_s4 + $0x30] sm:$0xff]   ;;  %v163_v42 = vsel %vm140_vm0, %v787_v40, 0  ;;  %v792_v47 = vld [vmem:[%s1082_s4 + $0x38] sm:$0xff]   ;;  %v166_v48 = vsel %vm140_vm0, %v791_v46, 0 }
   0xd   :  { %705 = vmatpush3.bf16.xpose.msra.mxu0 %v148_v10  ;;  %v377_v44 = vsel %vm354_vm1, %v788_v41, 0  ;;  %v380_v49 = vsel %vm354_vm1, %v792_v47, 0 }
   0xe   :  { %723 = vmatpush3.bf16.xpose.msra.mxu1 %v362_v12  ;;  %740 = vmatprep.subr.msk.bf16.mxu0 %vm140_vm0, %v769_v11 }
   0xf   :  { %748 = vmatprep.subr.msk.bf16.mxu1 %vm354_vm1, %v770_v13 }
  0x15   :  { %707 = vmatpush3.bf16.xpose.msra.mxu0 %v151_v16 }
  0x16   :  { %725 = vmatpush3.bf16.xpose.msra.mxu1 %v365_v18  ;;  %741 = vmatprep.subr.msk.bf16.mxu0 %vm140_vm0, %v773_v17 }
  0x17   :  { %749 = vmatprep.subr.msk.bf16.mxu1 %vm354_vm1, %v774_v19 }
  0x1d   :  { %709 = vmatpush3.bf16.xpose.msra.mxu0 %v154_v22 }
  0x1e   :  { %727 = vmatpush3.bf16.xpose.msra.mxu1 %v368_v24  ;;  %742 = vmatprep.subr.msk.bf16.mxu0 %vm140_vm0, %v777_v23 }
  0x1f   :  { %750 = vmatprep.subr.msk.bf16.mxu1 %vm354_vm1, %v778_v25 }
  0x25   :  { %711 = vmatpush3.bf16.xpose.msra.mxu0 %v157_v30 }
  0x26   :  { %729 = vmatpush3.bf16.xpose.msra.mxu1 %v371_v32  ;;  %743 = vmatprep.subr.msk.bf16.mxu0 %vm140_vm0, %v781_v31  ;;  %v1031_v31 = vld [vmem:[%s1085_s0 + $0x8] sm:$0xff]  ;;  %v1036_v32 = vld [vmem:[%s1085_s0] sm:$0xff] }
  0x27   :  { %751 = vmatprep.subr.msk.bf16.mxu1 %vm354_vm1, %v782_v33  ;;  %vm563_vm6 = vcmp.ne.s32.totalorder %v1036_v32, 4294967196  ;;  %vm564_vm7 = vcmp.ne.s32.totalorder %v1031_v31, 4294967196 }
  0x2d   :  { %713 = vmatpush3.bf16.xpose.msra.mxu0 %v160_v36 }
  0x2e   :  { %731 = vmatpush3.bf16.xpose.msra.mxu1 %v374_v38  ;;  %744 = vmatprep.subr.msk.bf16.mxu0 %vm140_vm0, %v785_v37  ;;  %v461_v37 = vand.u32 127, %v460_v34 }
  0x2f   :  { %752 = vmatprep.subr.msk.bf16.mxu1 %vm354_vm1, %v786_v39 }
  0x30   :  { %v462_v39 = vadd.s32 128, %v461_v37 }
  0x35   :  { %715 = vmatpush3.bf16.xpose.msra.mxu0 %v163_v42 }
  0x36   :  { %733 = vmatpush3.bf16.xpose.msra.mxu1 %v377_v44  ;;  %745 = vmatprep.subr.msk.bf16.mxu0 %vm140_vm0, %v789_v43 }
  0x37   :  { %753 = vmatprep.subr.msk.bf16.mxu1 %vm354_vm1, %v790_v45 }
  0x3d   :  { %717 = vmatpush3.bf16.xpose.msra.mxu0 %v166_v48 }
  0x3e   :  { %735 = vmatpush3.bf16.xpose.msra.mxu1 %v380_v49 }
  0x44   :  { %719 = vmatmul.mubr.msk.bf16.vlgmr.msra.gmra.mrb[0].mxu0 %vm140_vm0, %v793_v28 }
  0x45   :  { %737 = vmatmul.mubr.msk.bf16.vlgmr.msra.gmra.mrb[0].mxu1 %vm354_vm1, %v794_v29 }
 0x117   :  { %v226_v50 = vpop.f32.mrb[0].mxu0 }
 0x118   :  { %v440_v51 = vpop.f32.mrb[0].mxu1  ;;  %v228_v52 = vpop.f32.mrb[1].mxu0 }
 0x119   :  { %v442_v53 = vpop.f32.mrb[1].mxu1  ;;  %v230_v54 = vpop.f32.mrb[2].mxu0  ;;  %v473_v55 = vmax.f32 %v226_v50, %v228_v52 }
 0x11a   :  { %v232_v56 = vpop.f32.mrb[3].mxu0  ;;  %v444_v57 = vpop.f32.mrb[2].mxu1  ;;  %v513_v58 = vmax.f32 %v440_v51, %v442_v53 }
 0x11b   :  { %v476_v59 = vmax.f32 %v230_v54, %v232_v56  ;;  %v446_v60 = vpop.f32.mrb[3].mxu1  ;;  %474 = vmax.xlane.f32.xlu0 %v473_v55 }
 0x11c   :  { %514 = vmax.xlane.f32.xlu1 %v513_v58  ;;  %v516_v61 = vmax.f32 %v444_v57, %v446_v60 }
 0x11f   :  { %477 = vmax.xlane.f32.xlu0 %v476_v59 }
 0x120   :  { %517 = vmax.xlane.f32.xlu1 %v516_v61 }
 0x1a8   :  { %v475_v63 = vpop.xlane.xlu0 %474 }
 0x1a9   :  { %v515_v0 = vpop.xlane.xlu1 %514  ;;  %v1004_v1 = vsub.f32 %v226_v50, %v475_v63  ;;  %v1006_v2 = vsub.f32 %v228_v52, %v475_v63 }
 0x1aa   :  { %v1008_v3 = vsub.f32 %v440_v51, %v515_v0  ;;  %v1010_v4 = vsub.f32 %v442_v53, %v515_v0 }
 0x1ab   :  { %v483_v5 = vmul.f32 1.442695, %v1004_v1  ;;  %v485_v7 = vmul.f32 1.442695, %v1006_v2 }
 0x1ac   :  { %v523_v6 = vmul.f32 1.442695, %v1008_v3  ;;  %v478_v8 = vpop.xlane.xlu0 %477  ;;  %v525_v9 = vmul.f32 1.442695, %v1010_v4 }
 0x1ad   :  { %v518_v10 = vpop.xlane.xlu1 %517  ;;  %v1016_v11 = vsub.f32 %v230_v54, %v478_v8  ;;  %v1018_v12 = vsub.f32 %v232_v56, %v478_v8  ;;  %795 = vpow2.f32 %v483_v5 }
 0x1ae   :  { %v1020_v13 = vsub.f32 %v444_v57, %v518_v10  ;;  %v1022_v14 = vsub.f32 %v446_v60, %v518_v10  ;;  %797 = vpow2.f32 %v523_v6 }
 0x1af   :  { %v487_v15 = vmul.f32 1.442695, %v1016_v11  ;;  %799 = vpow2.f32 %v485_v7  ;;  %v489_v16 = vmul.f32 1.442695, %v1018_v12 }
 0x1b0   :  { %801 = vpow2.f32 %v525_v9  ;;  %v527_v17 = vmul.f32 1.442695, %v1020_v13  ;;  %v529_v18 = vmul.f32 1.442695, %v1022_v14 }
 0x1b1   :  { %803 = vpow2.f32 %v487_v15 }
 0x1b2   :  { %805 = vpow2.f32 %v489_v16 }
 0x1b3   :  { %807 = vpow2.f32 %v527_v17 }
 0x1b4   :  { %809 = vpow2.f32 %v529_v18 }
 0x1b7   :  { %v796_v19 = vpop.eup %795 }
 0x1b8   :  { %v798_v20 = vpop.eup %797 }
 0x1b9   :  { %v800_v21 = vpop.eup %799 }
 0x1ba   :  { %v802_v22 = vpop.eup %801  ;;  %v491_v23 = vadd.f32 %v800_v21, %v796_v19 }
 0x1bb   :  { %v804_v24 = vpop.eup %803  ;;  %v531_v27 = vadd.f32 %v802_v22, %v798_v20 }
 0x1bc   :  { %492 = vadd.xlane.f32.xlu0 %v491_v23  ;;  %v806_v25 = vpop.eup %805 }
 0x1bd   :  { %v808_v26 = vpop.eup %807  ;;  %v494_v28 = vadd.f32 %v806_v25, %v804_v24 }
 0x1be   :  { %v810_v29 = vpop.eup %809 }
 0x1bf   :  { %495 = vadd.xlane.f32.xlu1 %v494_v28  ;;  %v534_v30 = vadd.f32 %v810_v29, %v808_v26 }
 0x1c0   :  { %532 = vadd.xlane.f32.xlu0 %v531_v27 }
 0x1c3   :  { %535 = vadd.xlane.f32.xlu1 %v534_v30 }
 0x1d4   :  { %467 = vperm.xlu1 %760, %v1031_v31  }
 0x1d6   :  { %464 = vperm.xlu0 %759, %v1036_v32  }
 0x249   :  { %v493_v33 = vpop.xlane.xlu0 %492 }
 0x24a   :  { %811 = vlog2.f32 %v493_v33 }
 0x24b   :  { %813 = vrcp.f32 %v493_v33 }
 0x24c   :  { %v496_v35 = vpop.xlane.xlu1 %495 }
 0x24d   :  { %815 = vlog2.f32 %v496_v35  ;;  %v533_v36 = vpop.xlane.xlu0 %532 }
 0x24e   :  { %817 = vrcp.f32 %v496_v35 }
 0x24f   :  { %819 = vrcp.f32 %v533_v36 }
 0x250   :  { %v536_v38 = vpop.xlane.xlu1 %535 }
 0x251   :  { %821 = vrcp.f32 %v536_v38 }
 0x252   :  { %823 = vlog2.f32 %v533_v36 }
 0x253   :  { %825 = vlog2.f32 %v536_v38 }
 0x254   :  { %v812_v40 = vpop.eup %811  ;;  %v468_v44 = vpop.permute.xlu1 %467 }
 0x255   :  { %v814_v41 = vpop.eup %813  ;;  %v498_v42 = vmul.f32 0.6931472, %v812_v40  ;;  %v465_v43 = vpop.permute.xlu0 %464  ;;  %vm471_vm4 = vcmp.eq.s32.totalorder %v461_v37, %v468_v44  ;;  %vm472_vm5 = vcmp.eq.s32.totalorder %v462_v39, %v468_v44 }
 0x256   :  { %vm469_vm2 = vcmp.eq.s32.totalorder %v461_v37, %v465_v43  ;;  %vm470_vm3 = vcmp.eq.s32.totalorder %v462_v39, %v465_v43  ;;  %v1046_v48 = vmul.f32 %v814_v41, %v796_v19  ;;  %v1048_v50 = vmul.f32 %v814_v41, %v800_v21 }
 0x257   :  { %v1041_v45 = vsub.f32 %v1004_v1, %v498_v42  ;;  %v1044_v46 = vsub.f32 %v1006_v2, %v498_v42  ;;  %v816_v47 = vpop.eup %815 }
 0x258   :  { %v818_v49 = vpop.eup %817  ;;  %v500_v51 = vmul.f32 0.6931472, %v816_v47  ;;  %v584_v63 = vmul.f32 0.5, %v1046_v48  ;;  %v585_v0 = vmul.f32 0.5, %v1048_v50 }
 0x259   :  { %v553_v52 = vsel %vm469_vm2, %v1041_v45, 0.0  ;;  %v554_v53 = vsel %vm470_vm3, %v1044_v46, 0.0  ;;  %v820_v55 = vpop.eup %819  ;;  %v1052_v56 = vmul.f32 %v818_v49, %v804_v24  ;;  %v512_v62 = vmul.f32 %v818_v49, %v806_v25 }
 0x25a   :  { %v557_v54 = vadd.f32 %v554_v53, %v553_v52  ;;  %v1055_v57 = vsub.f32 %v1016_v11, %v500_v51  ;;  %v1058_v58 = vsub.f32 %v1018_v12, %v500_v51  ;;  %v549_v59 = vmul.f32 %v820_v55, %v798_v20 }
 0x25b   :  { %v550_v60 = vmul.f32 %v820_v55, %v802_v22  ;;  %v822_v61 = vpop.eup %821  ;;  %v586_v9 = vmul.f32 0.5, %v1052_v56  ;;  %v587_v16 = vmul.f32 0.5, %v512_v62 }
 0x25c   :  { %558 = vadd.xlane.f32.xlu1 %v557_v54  ;;  %v555_v1 = vsel %vm471_vm4, %v1055_v57, 0.0  ;;  %v551_v2 = vmul.f32 %v822_v61, %v808_v26  ;;  %v552_v5 = vmul.f32 %v822_v61, %v810_v29  ;;  %v588_v6 = vmul.f32 0.5, %v549_v59  ;;  %v824_v24 = vpop.eup %823 }
 0x25d   :  { %v589_v7 = vmul.f32 0.5, %v550_v60  ;;  %v556_v8 = vsel %vm472_vm5, %v1058_v58, 0.0  ;;  %v826_v25 = vpop.eup %825  ;;  %v538_v26 = vmul.f32 0.6931472, %v824_v24 }
 0x25e   :  { %v592_v10 = vadd.f32 %v588_v6, %v584_v63  ;;  %v560_v12 = vadd.f32 %v556_v8, %v555_v1  ;;  %v590_v15 = vmul.f32 0.5, %v551_v2  ;;  %v591_v17 = vmul.f32 0.5, %v552_v5 }
 0x25f   :  { %v593_v11 = vadd.f32 %v589_v7, %v585_v0  ;;  %v540_v27 = vmul.f32 0.6931472, %v826_v25  ;;  %v541_v30 = vsub.f32 %v1008_v3, %v538_v26  ;;  %v542_v35 = vsub.f32 %v1010_v4, %v538_v26 }
 0x260   :  { %v596_v18 = vmax.f32 %v592_v10, 1.1754944e-38  ;;  %v594_v20 = vadd.f32 %v590_v15, %v586_v9  ;;  %561 = vadd.xlane.f32.xlu0 %v560_v12  ;;  %v595_v21 = vadd.f32 %v591_v17, %v587_v16 }
 0x261   :  { %v597_v19 = vmax.f32 %v593_v11, 1.1754944e-38  ;;  %v543_v38 = vsub.f32 %v1020_v13, %v540_v27  ;;  %v544_v42 = vsub.f32 %v1022_v14, %v540_v27 }
 0x262   :  { %827 = vlog2.f32 %v596_v18  ;;  %v598_v22 = vmax.f32 %v594_v20, 1.1754944e-38  ;;  %v599_v23 = vmax.f32 %v595_v21, 1.1754944e-38 }
 0x263   :  { %829 = vlog2.f32 %v597_v19 }
 0x264   :  { %831 = vlog2.f32 %v598_v22 }
 0x265   :  { %833 = vlog2.f32 %v599_v23 }
 0x26c   :  { %v828_v28 = vpop.eup %827 }
 0x26d   :  { %v830_v29 = vpop.eup %829  ;;  %v601_v33 = vmul.f32 0.6931472, %v828_v28 }
 0x26e   :  { %v832_v34 = vpop.eup %831  ;;  %v603_v36 = vmul.f32 0.6931472, %v830_v29 }
 0x26f   :  { %v834_v37 = vpop.eup %833  ;;  %v608_v39 = vsub.f32 %v1041_v45, %v601_v33  ;;  %v605_v40 = vmul.f32 0.6931472, %v832_v34  ;;  %v620_v41 = vsub.f32 %v541_v30, %v601_v33 }
 0x270   :  { %v609_v43 = vsub.f32 %v1044_v46, %v603_v36  ;;  %v607_v44 = vmul.f32 0.6931472, %v834_v37  ;;  %v621_v47 = vsub.f32 %v542_v35, %v603_v36 }
 0x271   :  { %v610_v3 = vsub.f32 %v1055_v57, %v605_v40  ;;  %v612_v49 = vmul.f32 %v608_v39, %v1046_v48  ;;  %v624_v51 = vmul.f32 %v620_v41, %v549_v59  ;;  %v622_v4 = vsub.f32 %v543_v38, %v605_v40 }
 0x272   :  { %v611_v52 = vsub.f32 %v1058_v58, %v607_v44  ;;  %v613_v13 = vmul.f32 %v609_v43, %v1048_v50  ;;  %v625_v53 = vmul.f32 %v621_v47, %v550_v60  ;;  %v623_v45 = vsub.f32 %v544_v42, %v607_v44 }
 0x273   :  { %v616_v54 = vmul.f32 0.5, %v612_v49  ;;  %v628_v55 = vmul.f32 0.5, %v624_v51  ;;  %v614_v14 = vmul.f32 %v610_v3, %v1052_v56  ;;  %v626_v61 = vmul.f32 %v622_v4, %v551_v2 }
 0x274   :  { %v617_v46 = vmul.f32 0.5, %v613_v13  ;;  %v629_v63 = vmul.f32 0.5, %v625_v53  ;;  %v615_v0 = vmul.f32 %v611_v52, %v512_v62  ;;  %v627_v1 = vmul.f32 %v623_v45, %v552_v5 }
 0x275   :  { %v632_v57 = vadd.f32 %v628_v55, %v616_v54  ;;  %v618_v6 = vmul.f32 0.5, %v614_v14  ;;  %v630_v48 = vmul.f32 0.5, %v626_v61 }
 0x276   :  { %v633_v59 = vadd.f32 %v629_v63, %v617_v46  ;;  %v619_v7 = vmul.f32 0.5, %v615_v0  ;;  %v631_v8 = vmul.f32 0.5, %v627_v1 }
 0x277   :  { %v634_v58 = vadd.f32 %v630_v48, %v618_v6 }
 0x278   :  { %v636_v9 = vadd.f32 %v633_v59, %v632_v57  ;;  %v635_v50 = vadd.f32 %v631_v8, %v619_v7 }
 0x27a   :  { %637 = vadd.xlane.f32.xlu1 %v636_v9  ;;  %v639_v60 = vadd.f32 %v635_v50, %v634_v58 }
 0x27e   :  { %640 = vadd.xlane.f32.xlu1 %v639_v60 }
 0x2e9   :  { %v559_v10 = vpop.xlane.xlu1 %558 }
 0x2ea   :  { %v567_v11 = vsub.f32 0.0, %v559_v10 }
 0x2ec   :  { %v569_v62 = vsel %vm563_vm6, %v567_v11, 0.0 }
 0x2ed   :  { %v562_v56 = vpop.xlane.xlu0 %561  ;;  %v572_v12 = vsel %vm571_vm8, %v569_v62, 0.0 }
 0x2ee   :  { %v568_v2 = vsub.f32 0.0, %v562_v56 }
 0x2f0   :  { %v570_v5 = vsel %vm564_vm7, %v568_v2, 0.0 }
 0x2f1   :  { %v573_v15 = vsel %vm571_vm8, %v570_v5, 0.0 }
 0x2f2   :  { %v574_v16 = vadd.f32 %v573_v15, %v572_v12 }
 0x2f4   :  { %575 = vadd.xlane.f32.xlu1 %v574_v16 }
 0x307   :  { %v638_v17 = vpop.xlane.xlu1 %637 }
 0x308   :  { %v644_v19 = vsel %vm571_vm8, %v638_v17, 0.0 }
 0x30b   :  { %v641_v18 = vpop.xlane.xlu1 %640 }
 0x30c   :  { %v645_v20 = vsel %vm571_vm8, %v641_v18, 0.0 }
 0x30d   :  { %v646_v21 = vadd.f32 %v645_v20, %v644_v19 }
 0x30f   :  { %647 = vadd.xlane.f32.xlu1 %v646_v21 }
 0x381   :  { %v576_v22 = vpop.xlane.xlu1 %575 }
 0x382   :  { %v577_v23 = vrot.slane %v576_v22, 4 }
 0x384   :  { %v578_v32 = vadd.f32 %v577_v23, %v576_v22 }
 0x386   :  { %v579_v24 = vrot.slane %v578_v32, 2 }
 0x388   :  { %v580_v31 = vadd.f32 %v579_v24, %v578_v32 }
 0x38a   :  { %v581_v25 = vrot.slane %v580_v31, 1 }
 0x38c   :  { %v582_v26 = vadd.f32 %v581_v25, %v580_v31 }
 0x38e   :  { %754 = vpush %v582_v26 }
 0x39c   :  { %v648_v27 = vpop.xlane.xlu1 %647 }
 0x39d   :  { %v649_v28 = vrot.slane %v648_v27, 4 }
 0x39f   :  { %v650_v29 = vadd.f32 %v649_v28, %v648_v27 }
 0x3a1   :  { %v651_v30 = vrot.slane %v650_v29, 2 }
 0x3a3   :  { %v652_v33 = vadd.f32 %v651_v30, %v650_v29 }
 0x3a5   :  { %v653_v34 = vrot.slane %v652_v33, 1 }
 0x3a7   :  { %v654_v35 = vadd.f32 %v653_v34, %v652_v33 }
 0x3a9   :  { %756 = vpush %v654_v35 }
 0x3bf   :  { %s755_s0 = spop %754 }
 0x3c0   :  { %s656_s11 = smul.f32 0.5, %s755_s0 }
 0x3da   :  { %s757_s12 = spop %756 }
 0x3db   :  { %s657_s13 = smul.f32 0.5, %s757_s12 }
 0x3dd   :  { %s658_s14 = sadd.f32 %s657_s13, %s656_s11 }
 0x3df   :  { %v659_v36 = vstv %s658_s14 }
 0x3e0   :  { %661 = vst [vmem:[%s1086_s5] sm:$0xff] %v659_v36 }

</bundles_post_ra>
